<compile_context>
chip_gen: v5e
topology: v5e:2x2
jax: 0.10.0
libtpu: 0.0.40
codegen_flags: <defaults>
</compile_context>

<pallas_src>
import jax
import jax.numpy as jnp
from jax.experimental import pallas as pl
from jax.experimental.pallas import tpu as pltpu


LANE = 128   # lane width (last dim)
SUB = 8      # sublane width (second-to-last dim)


def _round_up(n, m):
    return -(-n // m) * m


def _pad2d(a, rows, cols):
    r, c = a.shape
    if r == rows and c == cols:
        return a
    return jnp.pad(a, ((0, rows - r), (0, cols - c)))


# --------------------------------------------------------------------------- #
# Kernel
# --------------------------------------------------------------------------- #
def mlp_kernel(x_ref,
               w1_ref, b1_ref,
               w2_ref, b2_ref,
               w3_ref, b3_ref,
               w4_ref, b4_ref,
               wo_ref, bo_ref,
               o_ref):
    """Fused forward: L1->ReLU->L2->ReLU->L3->ReLU->L4->ReLU->L4->ReLU->out.

    Weight refs are already [in, out] (pre-transposed + padded once on host),
    so every matmul is a plain last-dim contraction feeding the MXU, and the
    output store is lane-dense / unmasked.
    """
    relu = lambda h: jnp.maximum(h, 0.0)

    def linear(h, w, b):
        # Cast the activation operand to the (possibly bf16) weight dtype so the
        # MXU runs its fast path; accumulate in f32, bias add / ReLU stay f32
        # (v5e's VPU has no bf16 support).
        return jnp.dot(h.astype(w.dtype), w,
                       preferred_element_type=jnp.float32) + b

    x = x_ref[...]

    # Hoist the twice-used layer-4 weight/bias: single VMEM load, no relayout.
    w4 = w4_ref[...]
    b4 = b4_ref[...]

    h = relu(linear(x, w1_ref[...], b1_ref[...]))
    h = relu(linear(h, w2_ref[...], b2_ref[...]))
    h = relu(linear(h, w3_ref[...], b3_ref[...]))
    h = relu(linear(h, w4, b4))
    h = relu(linear(h, w4, b4))          # layer 4 applied twice, as in the reference
    o_ref[...] = linear(h, wo_ref[...], bo_ref[...]).astype(o_ref.dtype)


# --------------------------------------------------------------------------- #
# One-time host-side parameter preparation (do NOT call per forward)
# --------------------------------------------------------------------------- #
def prepare_params(params, weight_dtype=None):
    """Transpose PyTorch-convention W[out,in] -> [in,out], zero-pad to lane-dense
    multiples of 128, and (optionally) downcast weights to bf16.  Returns
    (prepared_arrays, meta).  Call ONCE and reuse across forward calls."""
    H, in_size = params["w1"].shape
    out_size = params["wo"].shape[0]

    in_p = _round_up(in_size, LANE)
    h_p = _round_up(H, LANE)
    out_p = _round_up(out_size, LANE)

    if weight_dtype is None:
        # v7x has only 64 MiB VMEM: if resident f32 weights would not fit,
        # fall back to bf16 (MXU-native on v5e/v6e/v7x).
        resident_f32 = 4 * (in_p * h_p + 3 * h_p * h_p + h_p * out_p)
        weight_dtype = (jnp.float32
                        if resident_f32 <= int(0.8 * (64 << 20))
                        else jnp.bfloat16)
        # TODO(synk): beyond ~h_p 2.5k even bf16 resident weights overflow v7x
        # VMEM; switch to pipelining the hidden dimension instead of residency.

    wd = jnp.dtype(weight_dtype)
    f32 = jnp.float32
    prep = {
        "w1": _pad2d(params["w1"].T.astype(wd), in_p, h_p),
        "w2": _pad2d(params["w2"].T.astype(wd), h_p, h_p),
        "w3": _pad2d(params["w3"].T.astype(wd), h_p, h_p),
        "w4": _pad2d(params["w4"].T.astype(wd), h_p, h_p),
        "wo": _pad2d(params["wo"].T.astype(wd), h_p, out_p),
        "b1": _pad2d(params["b1"].astype(f32), 1, h_p),
        "b2": _pad2d(params["b2"].astype(f32), 1, h_p),
        "b3": _pad2d(params["b3"].astype(f32), 1, h_p),
        "b4": _pad2d(params["b4"].astype(f32), 1, h_p),
        "bo": _pad2d(params["bo"].astype(f32), 1, out_p),
    }
    # Materialize once so the transposes/pads are not re-executed per call.
    prep = {k: jax.block_until_ready(jax.device_put(v)) for k, v in prep.items()}
    meta = dict(in_size=in_size, hidden=H, out_size=out_size,
                in_p=in_p, h_p=h_p, out_p=out_p, weight_dtype=wd)
    return prep, meta


# --------------------------------------------------------------------------- #
# Forward
# --------------------------------------------------------------------------- #
def simple_feedforward_nn(x, prep, meta):
    """x: (B, input_size) float32. prep/meta from prepare_params()."""
    B, in_size = x.shape
    assert in_size == meta["in_size"]
    in_p, h_p, out_p = meta["in_p"], meta["h_p"], meta["out_p"]
    out_size = meta["out_size"]

    x = x.astype(jnp.float32)

    # Batch tiling: one full block for small batches; otherwise 128..512-row
    # blocks with >= 2 grid steps so ("parallel",) shards across both v7x TCs.
    B_p = _round_up(B, SUB)
    if B_p <= 128:
        bb = B_p
    else:
        half = _round_up(B_p, 2 * LANE) // 2          # B_p/2 rounded up to 128
        bb = max(LANE, min(512, half))
        B_p = _round_up(B_p, bb)
    grid = (B_p // bb,)

    # Pad x only when strictly needed (avoids an extra HBM round trip).
    x_p = x if (B_p == B and in_p == in_size) else _pad2d(x, B_p, in_p)

    args = (x_p,
            prep["w1"], prep["b1"], prep["w2"], prep["b2"],
            prep["w3"], prep["b3"], prep["w4"], prep["b4"],
            prep["wo"], prep["bo"])

    resident_bytes = sum(int(prep[k].size) * prep[k].dtype.itemsize
                         for k in ("w1", "w2", "w3", "w4", "wo",
                                   "b1", "b2", "b3", "b4", "bo"))
    # Single-buffer the grid-invariant weights only when it matters (large
    # hidden sizes); at tiny sizes keep the plain, always-supported spec.
    want_single_buffer = resident_bytes > (4 << 20)

    def make_specs(single_buffer):
        def resident(shape):
            if single_buffer and hasattr(pl, "Buffered"):
                try:
                    return pl.BlockSpec(shape, lambda i: (0, 0),
                                        pipeline_mode=pl.Buffered(1))
                except TypeError:
                    pass
            return pl.BlockSpec(shape, lambda i: (0, 0))
        in_specs = [
            pl.BlockSpec((bb, in_p), lambda i: (i, 0)),       # x: batch-tiled
            resident((in_p, h_p)), resident((1, h_p)),        # layer 1
            resident((h_p, h_p)), resident((1, h_p)),         # layer 2
            resident((h_p, h_p)), resident((1, h_p)),         # layer 3
            resident((h_p, h_p)), resident((1, h_p)),         # layer 4 (used twice)
            resident((h_p, out_p)), resident((1, out_p)),     # output layer
        ]
        out_specs = pl.BlockSpec((bb, out_p), lambda i: (i, 0))
        return in_specs, out_specs

    # Cost estimate over TRUE (unpadded) dims, each weight counted once.
    H = meta["hidden"]
    w_itemsize = meta["weight_dtype"].itemsize
    flops = 2 * B * (in_size * H + 4 * H * H + H * out_size)
    bytes_accessed = (B * (in_size + out_size) * 4
                      + (in_size * H + 3 * H * H + H * out_size) * w_itemsize
                      + (4 * H + out_size) * 4)
    cost = pl.CostEstimate(flops=int(flops), transcendentals=0,
                           bytes_accessed=int(bytes_accessed))

    # VMEM budget: resident weights/biases + double-buffered x/out blocks +
    # intermediate activations, with 2x headroom; floor 16 MiB (v5e default),
    # cap 64 MiB (valid on v7x too).
    io_bytes = 2 * bb * (in_p + out_p) * 4
    act_bytes = 4 * bb * max(in_p, h_p, out_p) * 4
    vmem_limit = int(min(64 << 20,
                         max(16 << 20, 2 * (resident_bytes + io_bytes + act_bytes))))

    def run(single_buffer):
        in_specs, out_specs = make_specs(single_buffer)
        return pl.pallas_call(
            mlp_kernel,
            out_shape=jax.ShapeDtypeStruct((B_p, out_p), jnp.float32),
            grid=grid,
            in_specs=in_specs,
            out_specs=out_specs,
            compiler_params=pltpu.CompilerParams(
                dimension_semantics=("parallel",),
                vmem_limit_bytes=vmem_limit),
            cost_estimate=cost,
        )(*args)

    if want_single_buffer:
        try:
            out_full = run(True)
        except Exception:   # pl.Buffered(1) unsupported on this jax -> fall back
            out_full = run(False)
    else:
        out_full = run(False)

    if B_p == B and out_p == out_size:
        return out_full
    return out_full[:B, :out_size]


# --------------------------------------------------------------------------- #
# Parameter init (mimics nn.Linear default) and pure-JAX reference
# --------------------------------------------------------------------------- #
def init_params(key, input_size, hidden_size, output_size):
    def linear_init(k, fan_out, fan_in):
        kw, kb = jax.random.split(k)
        bound = 1.0 / jnp.sqrt(fan_in)
        w = jax.random.uniform(kw, (fan_out, fan_in), jnp.float32, -bound, bound)
        b = jax.random.uniform(kb, (1, fan_out), jnp.float32, -bound, bound)
        return w, b

    keys = jax.random.split(key, 6)
    w1, b1 = linear_init(keys[0], hidden_size, input_size)
    w2, b2 = linear_init(keys[1], hidden_size, hidden_size)
    w3, b3 = linear_init(keys[2], hidden_size, hidden_size)
    w4, b4 = linear_init(keys[3], hidden_size, hidden_size)
    w5, b5 = linear_init(keys[4], hidden_size, hidden_size)  # defined, unused in forward
    wo, bo = linear_init(keys[5], output_size, hidden_size)
    return {"w1": w1, "b1": b1, "w2": w2, "b2": b2, "w3": w3, "b3": b3,
            "w4": w4, "b4": b4, "w5": w5, "b5": b5, "wo": wo, "bo": bo}


def reference_forward(x, p):
    relu = lambda h: jnp.maximum(h, 0.0)
    h = relu(x @ p["w1"].T + p["b1"])
    h = relu(h @ p["w2"].T + p["b2"])
    h = relu(h @ p["w3"].T + p["b3"])
    h = relu(h @ p["w4"].T + p["b4"])
    h = relu(h @ p["w4"].T + p["b4"])
    return h @ p["wo"].T + p["bo"]


if __name__ == "__main__":
    input_size, hidden_size, output_size = 16, 32, 8
    batch = 8

    key = jax.random.PRNGKey(0)
    kx, kp = jax.random.split(key)
    x = jax.random.normal(kx, (batch, input_size), dtype=jnp.float32)
    params = init_params(kp, input_size, hidden_size, output_size)

    # One-time host prep (transpose + pad + device_put), reused across calls.
    prep, meta = prepare_params(params)

    out = simple_feedforward_nn(x, prep, meta)
    out = jax.block_until_ready(out)

    ref = reference_forward(x, params)
    assert out.shape == (batch, output_size)
    tol = 1e-5 if meta["weight_dtype"] == jnp.dtype(jnp.float32) else 2e-2
    assert jnp.allclose(out, ref, atol=tol, rtol=tol)

    print("KERNEL_OK")
</pallas_src>

<mosaic_0001>
module attributes {stable_mosaic.version = 11 : i64} {
  func.func @mlp_kernel(%arg0: i32, %arg1: memref<8x128xf32, #tpu.memory_space<vmem>>, %arg2: memref<128x128xf32, #tpu.memory_space<vmem>>, %arg3: memref<1x128xf32, #tpu.memory_space<vmem>>, %arg4: memref<128x128xf32, #tpu.memory_space<vmem>>, %arg5: memref<1x128xf32, #tpu.memory_space<vmem>>, %arg6: memref<128x128xf32, #tpu.memory_space<vmem>>, %arg7: memref<1x128xf32, #tpu.memory_space<vmem>>, %arg8: memref<128x128xf32, #tpu.memory_space<vmem>>, %arg9: memref<1x128xf32, #tpu.memory_space<vmem>>, %arg10: memref<128x128xf32, #tpu.memory_space<vmem>>, %arg11: memref<1x128xf32, #tpu.memory_space<vmem>>, %arg12: memref<8x128xf32, #tpu.memory_space<vmem>>) attributes {dimension_semantics = [#tpu.dimension_semantics<parallel>], iteration_bounds = array<i64: 1>, scalar_prefetch = 0 : i64, scratch_operands = 0 : i64, tpu.core_type = #tpu.core_type<tc>, window_params = [{transform_indices = @transform_0, window_bounds = array<i64: 8, 128>}, {pipeline_mode = #tpu.pipeline_mode<synchronous>, transform_indices = @transform_1, window_bounds = array<i64: 128, 128>}, {pipeline_mode = #tpu.pipeline_mode<synchronous>, transform_indices = @transform_2, window_bounds = array<i64: 1, 128>}, {pipeline_mode = #tpu.pipeline_mode<synchronous>, transform_indices = @transform_3, window_bounds = array<i64: 128, 128>}, {pipeline_mode = #tpu.pipeline_mode<synchronous>, transform_indices = @transform_4, window_bounds = array<i64: 1, 128>}, {pipeline_mode = #tpu.pipeline_mode<synchronous>, transform_indices = @transform_5, window_bounds = array<i64: 128, 128>}, {pipeline_mode = #tpu.pipeline_mode<synchronous>, transform_indices = @transform_6, window_bounds = array<i64: 1, 128>}, {pipeline_mode = #tpu.pipeline_mode<synchronous>, transform_indices = @transform_7, window_bounds = array<i64: 128, 128>}, {pipeline_mode = #tpu.pipeline_mode<synchronous>, transform_indices = @transform_8, window_bounds = array<i64: 1, 128>}, {pipeline_mode = #tpu.pipeline_mode<synchronous>, transform_indices = @transform_9, window_bounds = array<i64: 128, 128>}, {pipeline_mode = #tpu.pipeline_mode<synchronous>, transform_indices = @transform_10, window_bounds = array<i64: 1, 128>}, {transform_indices = @transform_11, window_bounds = array<i64: 8, 128>}]} {
    %c0 = arith.constant 0 : index
    %c0_0 = arith.constant 0 : index
    %0 = vector.load %arg1[%c0, %c0_0] : memref<8x128xf32, #tpu.memory_space<vmem>>, vector<8x128xf32>
    %c0_1 = arith.constant 0 : index
    %c0_2 = arith.constant 0 : index
    %1 = vector.load %arg8[%c0_1, %c0_2] : memref<128x128xf32, #tpu.memory_space<vmem>>, vector<128x128xf32>
    %c0_3 = arith.constant 0 : index
    %c0_4 = arith.constant 0 : index
    %2 = vector.load %arg9[%c0_3, %c0_4] : memref<1x128xf32, #tpu.memory_space<vmem>>, vector<1x128xf32>
    %c0_5 = arith.constant 0 : index
    %c0_6 = arith.constant 0 : index
    %3 = vector.load %arg2[%c0_5, %c0_6] : memref<128x128xf32, #tpu.memory_space<vmem>>, vector<128x128xf32>
    %c0_7 = arith.constant 0 : index
    %c0_8 = arith.constant 0 : index
    %4 = vector.load %arg3[%c0_7, %c0_8] : memref<1x128xf32, #tpu.memory_space<vmem>>, vector<1x128xf32>
    %cst = arith.constant dense<0.000000e+00> : vector<8x128xf32>
    %5 = tpu.matmul %0, %3, %cst {dimension_numbers = #tpu.dot_dimension_numbers<[1], [0], [0], [1], [0, 0, 1, 1], [], []>} : vector<8x128xf32>, vector<128x128xf32>, vector<8x128xf32> -> vector<8x128xf32>
    %6 = vector.broadcast %4 : vector<1x128xf32> to vector<8x128xf32>
    %7 = arith.addf %5, %6 : vector<8x128xf32>
    %cst_9 = arith.constant 0.000000e+00 : f32
    %8 = vector.broadcast %cst_9 : f32 to vector<8x128xf32>
    %9 = arith.maximumf %7, %8 : vector<8x128xf32>
    %c0_10 = arith.constant 0 : index
    %c0_11 = arith.constant 0 : index
    %10 = vector.load %arg4[%c0_10, %c0_11] : memref<128x128xf32, #tpu.memory_space<vmem>>, vector<128x128xf32>
    %c0_12 = arith.constant 0 : index
    %c0_13 = arith.constant 0 : index
    %11 = vector.load %arg5[%c0_12, %c0_13] : memref<1x128xf32, #tpu.memory_space<vmem>>, vector<1x128xf32>
    %cst_14 = arith.constant dense<0.000000e+00> : vector<8x128xf32>
    %12 = tpu.matmul %9, %10, %cst_14 {dimension_numbers = #tpu.dot_dimension_numbers<[1], [0], [0], [1], [0, 0, 1, 1], [], []>} : vector<8x128xf32>, vector<128x128xf32>, vector<8x128xf32> -> vector<8x128xf32>
    %13 = vector.broadcast %11 : vector<1x128xf32> to vector<8x128xf32>
    %14 = arith.addf %12, %13 : vector<8x128xf32>
    %cst_15 = arith.constant 0.000000e+00 : f32
    %15 = vector.broadcast %cst_15 : f32 to vector<8x128xf32>
    %16 = arith.maximumf %14, %15 : vector<8x128xf32>
    %c0_16 = arith.constant 0 : index
    %c0_17 = arith.constant 0 : index
    %17 = vector.load %arg6[%c0_16, %c0_17] : memref<128x128xf32, #tpu.memory_space<vmem>>, vector<128x128xf32>
    %c0_18 = arith.constant 0 : index
    %c0_19 = arith.constant 0 : index
    %18 = vector.load %arg7[%c0_18, %c0_19] : memref<1x128xf32, #tpu.memory_space<vmem>>, vector<1x128xf32>
    %cst_20 = arith.constant dense<0.000000e+00> : vector<8x128xf32>
    %19 = tpu.matmul %16, %17, %cst_20 {dimension_numbers = #tpu.dot_dimension_numbers<[1], [0], [0], [1], [0, 0, 1, 1], [], []>} : vector<8x128xf32>, vector<128x128xf32>, vector<8x128xf32> -> vector<8x128xf32>
    %20 = vector.broadcast %18 : vector<1x128xf32> to vector<8x128xf32>
    %21 = arith.addf %19, %20 : vector<8x128xf32>
    %cst_21 = arith.constant 0.000000e+00 : f32
    %22 = vector.broadcast %cst_21 : f32 to vector<8x128xf32>
    %23 = arith.maximumf %21, %22 : vector<8x128xf32>
    %cst_22 = arith.constant dense<0.000000e+00> : vector<8x128xf32>
    %24 = tpu.matmul %23, %1, %cst_22 {dimension_numbers = #tpu.dot_dimension_numbers<[1], [0], [0], [1], [0, 0, 1, 1], [], []>} : vector<8x128xf32>, vector<128x128xf32>, vector<8x128xf32> -> vector<8x128xf32>
    %25 = vector.broadcast %2 : vector<1x128xf32> to vector<8x128xf32>
    %26 = arith.addf %24, %25 : vector<8x128xf32>
    %cst_23 = arith.constant 0.000000e+00 : f32
    %27 = vector.broadcast %cst_23 : f32 to vector<8x128xf32>
    %28 = arith.maximumf %26, %27 : vector<8x128xf32>
    %cst_24 = arith.constant dense<0.000000e+00> : vector<8x128xf32>
    %29 = tpu.matmul %28, %1, %cst_24 {dimension_numbers = #tpu.dot_dimension_numbers<[1], [0], [0], [1], [0, 0, 1, 1], [], []>} : vector<8x128xf32>, vector<128x128xf32>, vector<8x128xf32> -> vector<8x128xf32>
    %30 = vector.broadcast %2 : vector<1x128xf32> to vector<8x128xf32>
    %31 = arith.addf %29, %30 : vector<8x128xf32>
    %cst_25 = arith.constant 0.000000e+00 : f32
    %32 = vector.broadcast %cst_25 : f32 to vector<8x128xf32>
    %33 = arith.maximumf %31, %32 : vector<8x128xf32>
    %c0_26 = arith.constant 0 : index
    %c0_27 = arith.constant 0 : index
    %34 = vector.load %arg10[%c0_26, %c0_27] : memref<128x128xf32, #tpu.memory_space<vmem>>, vector<128x128xf32>
    %c0_28 = arith.constant 0 : index
    %c0_29 = arith.constant 0 : index
    %35 = vector.load %arg11[%c0_28, %c0_29] : memref<1x128xf32, #tpu.memory_space<vmem>>, vector<1x128xf32>
    %cst_30 = arith.constant dense<0.000000e+00> : vector<8x128xf32>
    %36 = tpu.matmul %33, %34, %cst_30 {dimension_numbers = #tpu.dot_dimension_numbers<[1], [0], [0], [1], [0, 0, 1, 1], [], []>} : vector<8x128xf32>, vector<128x128xf32>, vector<8x128xf32> -> vector<8x128xf32>
    %37 = vector.broadcast %35 : vector<1x128xf32> to vector<8x128xf32>
    %38 = arith.addf %36, %37 : vector<8x128xf32>
    %c0_31 = arith.constant 0 : index
    %c0_32 = arith.constant 0 : index
    %39 = vector.load %arg12[%c0_31, %c0_32] : memref<8x128xf32, #tpu.memory_space<vmem>>, vector<8x128xf32>
    tpu.vector_store %arg12[%c0_31, %c0_32], %38 {strides = array<i32>} : memref<8x128xf32, #tpu.memory_space<vmem>>, vector<8x128xf32>,
    return
  }
  func.func @transform_0(%arg0: i32) -> (i32, i32) {
    %c0_i32 = arith.constant 0 : i32
    %c0_i32_0 = arith.constant 0 : i32
    return %arg0, %c0_i32 : i32, i32
  }
  func.func @transform_1(%arg0: i32) -> (i32, i32) {
    %c0_i32 = arith.constant 0 : i32
    %c0_i32_0 = arith.constant 0 : i32
    %c0_i32_1 = arith.constant 0 : i32
    return %c0_i32, %c0_i32_0 : i32, i32
  }
  func.func @transform_2(%arg0: i32) -> (i32, i32) {
    %c0_i32 = arith.constant 0 : i32
    %c0_i32_0 = arith.constant 0 : i32
    %c0_i32_1 = arith.constant 0 : i32
    return %c0_i32, %c0_i32_0 : i32, i32
  }
  func.func @transform_3(%arg0: i32) -> (i32, i32) {
    %c0_i32 = arith.constant 0 : i32
    %c0_i32_0 = arith.constant 0 : i32
    %c0_i32_1 = arith.constant 0 : i32
    return %c0_i32, %c0_i32_0 : i32, i32
  }
  func.func @transform_4(%arg0: i32) -> (i32, i32) {
    %c0_i32 = arith.constant 0 : i32
    %c0_i32_0 = arith.constant 0 : i32
    %c0_i32_1 = arith.constant 0 : i32
    return %c0_i32, %c0_i32_0 : i32, i32
  }
  func.func @transform_5(%arg0: i32) -> (i32, i32) {
    %c0_i32 = arith.constant 0 : i32
    %c0_i32_0 = arith.constant 0 : i32
    %c0_i32_1 = arith.constant 0 : i32
    return %c0_i32, %c0_i32_0 : i32, i32
  }
  func.func @transform_6(%arg0: i32) -> (i32, i32) {
    %c0_i32 = arith.constant 0 : i32
    %c0_i32_0 = arith.constant 0 : i32
    %c0_i32_1 = arith.constant 0 : i32
    return %c0_i32, %c0_i32_0 : i32, i32
  }
  func.func @transform_7(%arg0: i32) -> (i32, i32) {
    %c0_i32 = arith.constant 0 : i32
    %c0_i32_0 = arith.constant 0 : i32
    %c0_i32_1 = arith.constant 0 : i32
    return %c0_i32, %c0_i32_0 : i32, i32
  }
  func.func @transform_8(%arg0: i32) -> (i32, i32) {
    %c0_i32 = arith.constant 0 : i32
    %c0_i32_0 = arith.constant 0 : i32
    %c0_i32_1 = arith.constant 0 : i32
    return %c0_i32, %c0_i32_0 : i32, i32
  }
  func.func @transform_9(%arg0: i32) -> (i32, i32) {
    %c0_i32 = arith.constant 0 : i32
    %c0_i32_0 = arith.constant 0 : i32
    %c0_i32_1 = arith.constant 0 : i32
    return %c0_i32, %c0_i32_0 : i32, i32
  }
  func.func @transform_10(%arg0: i32) -> (i32, i32) {
    %c0_i32 = arith.constant 0 : i32
    %c0_i32_0 = arith.constant 0 : i32
    %c0_i32_1 = arith.constant 0 : i32
    return %c0_i32, %c0_i32_0 : i32, i32
  }
  func.func @transform_11(%arg0: i32) -> (i32, i32) {
    %c0_i32 = arith.constant 0 : i32
    %c0_i32_0 = arith.constant 0 : i32
    return %arg0, %c0_i32 : i32, i32
  }
}

</mosaic_0001>

<bundles_post_ra>
// kernel: tpu_custom_call.1
= control target key start
LH: loop header
LB: loop body
LE: loop exit
PB: predicated region body
PF: predicated region fallthrough
CT: control target
= control target key end

     0   :  { %16 = vsyncpa [#allocation3], 0  ;;  %s690_s0 = inlined_call_operand.hbm [shape: f32[8,128], index: 0, kind: input, shape index: {}]   ;;  %s691_s1 = inlined_call_operand.hbm [shape: f32[128,128], index: 1, kind: input, shape index: {}]   ;;  %s692_s2 = inlined_call_operand.vmem [shape: f32[1,128], index: 2, kind: input, shape index: {}]   ;;  %s693_s3 = inlined_call_operand.hbm [shape: f32[128,128], index: 3, kind: input, shape index: {}]   ;;  %s694_s4 = inlined_call_operand.vmem [shape: f32[1,128], index: 4, kind: input, shape index: {}]   ;;  %s695_s5 = inlined_call_operand.hbm [shape: f32[128,128], index: 5, kind: input, shape index: {}]   ;;  %s696_s6 = inlined_call_operand.vmem [shape: f32[1,128], index: 6, kind: input, shape index: {}]   ;;  %s697_s7 = inlined_call_operand.hbm [shape: f32[128,128], index: 7, kind: input, shape index: {}]   ;;  %s698_s8 = inlined_call_operand.vmem [shape: f32[1,128], index: 8, kind: input, shape index: {}]   ;;  %s699_s9 = inlined_call_operand.hbm [shape: f32[128,128], index: 9, kind: input, shape index: {}]   ;;  %s700_s10 = inlined_call_operand.vmem [shape: f32[1,128], index: 10, kind: input, shape index: {}]   ;;  %s701_s11 = inlined_call_operand.hbm [shape: f32[8,128], index: 11, kind: output, shape index: {}]  }
   0x1   :  { %17 = vsyncpa [#allocation6], 0 }
   0x2   :  { %18 = vsyncpa [#allocation9], 0 }
   0x3   :  { %19 = vsyncpa [#allocation12], 0  ;;  %s36_s19 = sshll.u32 %s691_s1, 4  ;;  %s37_s19 = int_to_ptr.hbm [resolvable:$true] %s36_s19 }
   0x4   :  { %20 = vsyncpa [#allocation4], 0  ;;  %s570_s20 = smov [#allocation5]   ;;  %s66_s24 = sshll.u32 %s695_s5, 4  ;;  %s67_s24 = int_to_ptr.hbm [resolvable:$true] %s66_s24 }
   0x5   :  { %s38_s21 = sshll.u32 %s570_s20, 4  ;;  %s571_s25 = smov 128   ;;  %s39_s21 = int_to_ptr.vmem [resolvable:$true] %s38_s21 }
   0x6   :  { %s572_s26 = smov 8   ;;  %s573_s27 = smov [#allocation8]  }
   0x7   :  { %44 = dma.hbm_to_vmem [thread:$0]  %s37_s19, 2048, %s39_s21, [#allocation6], %s571_s25, %s571_s25, %s572_s26  }
   0x8   :  { %s68_s28 = sshll.u32 %s573_s27, 4  ;;  %s26_s30 = sshll.u32 %s690_s0, 4  ;;  %s69_s28 = int_to_ptr.vmem [resolvable:$true] %s68_s28  ;;  %s27_s30 = int_to_ptr.hbm [resolvable:$true] %s26_s30 }
   0x9   :  { %74 = dma.hbm_to_vmem [thread:$0]  %s67_s24, 2048, %s69_s28, [#allocation9], %s571_s25, %s571_s25, %s572_s26  }
   0xa   :  { %s51_s13 = sshll.u32 %s693_s3, 4  ;;  %s574_s14 = smov [#allocation2]   ;;  %s52_s13 = int_to_ptr.hbm [resolvable:$true] %s51_s13 }
   0xb   :  { %s28_s15 = sshll.u32 %s574_s14, 4  ;;  %s575_s16 = smov [#allocation7]   ;;  %s29_s15 = int_to_ptr.vmem [resolvable:$true] %s28_s15 }
   0xc   :  { %31 = dma.hbm_to_vmem [thread:$0]  %s27_s30, 128, %s29_s15, [#allocation3]  }
   0xd   :  { %s53_s17 = sshll.u32 %s575_s16, 4  ;;  %s81_s0 = sshll.u32 %s697_s7, 4  ;;  %s54_s17 = int_to_ptr.vmem [resolvable:$true] %s53_s17  ;;  %s82_s0 = int_to_ptr.hbm [resolvable:$true] %s81_s0 }
   0xe   :  { %59 = dma.hbm_to_vmem [thread:$0]  %s52_s13, 2048, %s54_s17, [#allocation6], %s571_s25, %s571_s25, %s572_s26  }
   0xf   :  { %s96_s3 = sshll.u32 %s699_s9, 4  ;;  %s576_s22 = smov [#allocation10]   ;;  %s97_s3 = int_to_ptr.hbm [resolvable:$true] %s96_s3 }
  0x10   :  { %s83_s23 = sshll.u32 %s576_s22, 4  ;;  %s577_s24 = smov [#allocation11]   ;;  %s84_s23 = int_to_ptr.vmem [resolvable:$true] %s83_s23 }
  0x11   :  { %89 = dma.hbm_to_vmem [thread:$0]  %s82_s0, 2048, %s84_s23, [#allocation9], %s571_s25, %s571_s25, %s572_s26  }
  0x12   :  { %s98_s7 = sshll.u32 %s577_s24, 4  ;;  %s99_s7 = int_to_ptr.vmem [resolvable:$true] %s98_s7 }
  0x13   :  { %104 = dma.hbm_to_vmem [thread:$0]  %s97_s3, 2048, %s99_s7, [#allocation12], %s571_s25, %s571_s25, %s572_s26  }
  0x14   :  { %560 = dma.done.wait [#allocation3], 128  }
  0x15   :  { %561 = vsyncadd [#allocation3], 4294967168 }
  0x16   :  { %562 = dma.done.wait [#allocation6], 4096  }
  0x17   :  { %563 = vsyncadd [#allocation6], 4294963200 }
  0x18   :  { %564 = dma.done.wait [#allocation9], 4096  }
  0x19   :  { %565 = vsyncadd [#allocation9], 4294963200 }
  0x1a   :  { %566 = dma.done.wait [#allocation12], 2048  }
  0x1b   :  { %567 = vsyncadd [#allocation12], 4294965248  ;;  %v164_v0 = vld [vmem:[#allocation5 + $0x78] sm:$0xff]  ;;  %v163_v1 = vld [vmem:[#allocation5 + $0x70] sm:$0xff]  ;;  %s365_s13 = sshll.u32 %s701_s11, 4  ;;  %s366_s13 = int_to_ptr.hbm [resolvable:$true] %s365_s13 }
  0x1c   :  { %169 = vmatpush.msra.mxu0 %v164_v0  ;;  %v162_v2 = vld [vmem:[#allocation5 + $0x68] sm:$0xff]  ;;  %v161_v3 = vld [vmem:[#allocation5 + $0x60] sm:$0xff]  ;;  %v205_v4 = vld [vmem:[#allocation7 + $0x78] sm:$0xff] }
  0x1d   :  { %v160_v5 = vld [vmem:[#allocation5 + $0x58] sm:$0xff]  ;;  %210 = vmatpush.msra.mxu1 %v205_v4  ;;  %v204_v6 = vld [vmem:[#allocation7 + $0x70] sm:$0xff]  ;;  %v203_v7 = vld [vmem:[#allocation7 + $0x68] sm:$0xff] }
  0x1e   :  { %170 = vmatpush.msra.mxu0 %v163_v1  ;;  %v159_v8 = vld [vmem:[#allocation5 + $0x50] sm:$0xff]  ;;  %v158_v9 = vld [vmem:[#allocation5 + $0x48] sm:$0xff]  ;;  %v202_v10 = vld [vmem:[#allocation7 + $0x60] sm:$0xff] }
  0x1f   :  { %211 = vmatpush.msra.mxu1 %v204_v6  ;;  %v201_v11 = vld [vmem:[#allocation7 + $0x58] sm:$0xff]  ;;  %v157_v12 = vld [vmem:[#allocation5 + $0x40] sm:$0xff]  ;;  %v200_v13 = vld [vmem:[#allocation7 + $0x50] sm:$0xff] }
  0x20   :  { %171 = vmatpush.msra.mxu0 %v162_v2  ;;  %v156_v14 = vld [vmem:[#allocation5 + $0x38] sm:$0xff]  ;;  %v199_v15 = vld [vmem:[#allocation7 + $0x48] sm:$0xff]  ;;  %v155_v16 = vld [vmem:[#allocation5 + $0x30] sm:$0xff] }
  0x21   :  { %212 = vmatpush.msra.mxu1 %v203_v7  ;;  %v198_v17 = vld [vmem:[#allocation7 + $0x40] sm:$0xff]  ;;  %v154_v18 = vld [vmem:[#allocation5 + $0x28] sm:$0xff]  ;;  %v197_v19 = vld [vmem:[#allocation7 + $0x38] sm:$0xff] }
  0x22   :  { %172 = vmatpush.msra.mxu0 %v161_v3  ;;  %v153_v20 = vld [vmem:[#allocation5 + $0x20] sm:$0xff]  ;;  %v196_v21 = vld [vmem:[#allocation7 + $0x30] sm:$0xff]  ;;  %v152_v22 = vld [vmem:[#allocation5 + $0x18] sm:$0xff] }
  0x23   :  { %213 = vmatpush.msra.mxu1 %v202_v10  ;;  %v195_v23 = vld [vmem:[#allocation7 + $0x28] sm:$0xff]  ;;  %v151_v24 = vld [vmem:[#allocation5 + $0x10] sm:$0xff]  ;;  %v194_v25 = vld [vmem:[#allocation7 + $0x20] sm:$0xff] }
  0x24   :  { %173 = vmatpush.msra.mxu0 %v160_v5  ;;  %v150_v26 = vld [vmem:[#allocation5 + $0x8] sm:$0xff]  ;;  %v193_v27 = vld [vmem:[#allocation7 + $0x18] sm:$0xff]  ;;  %v149_v28 = vld [vmem:[#allocation5] sm:$0xff] }
  0x25   :  { %214 = vmatpush.msra.mxu1 %v201_v11  ;;  %v131_v29 = vld [vmem:[#allocation2] sm:$0xff]  ;;  %v192_v30 = vld [vmem:[#allocation7 + $0x10] sm:$0xff]  ;;  %v191_v31 = vld [vmem:[#allocation7 + $0x8] sm:$0xff] }
  0x26   :  { %174 = vmatpush.msra.mxu0 %v159_v8  ;;  %v190_v32 = vld [vmem:[#allocation7] sm:$0xff]  ;;  %v246_v33 = vld [vmem:[#allocation8 + $0x78] sm:$0xff]  ;;  %v245_v34 = vld [vmem:[#allocation8 + $0x70] sm:$0xff] }
  0x27   :  { %215 = vmatpush.msra.mxu1 %v200_v13  ;;  %251 = vmatpush.msra.mxu2 %v246_v33  ;;  %v244_v35 = vld [vmem:[#allocation8 + $0x68] sm:$0xff]  ;;  %v243_v36 = vld [vmem:[#allocation8 + $0x60] sm:$0xff]  ;;  %v242_v37 = vld [vmem:[#allocation8 + $0x58] sm:$0xff] }
  0x28   :  { %175 = vmatpush.msra.mxu0 %v158_v9  ;;  %v241_v38 = vld [vmem:[#allocation8 + $0x50] sm:$0xff]  ;;  %v240_v39 = vld [vmem:[#allocation8 + $0x48] sm:$0xff]  ;;  %v239_v40 = vld [vmem:[#allocation8 + $0x40] sm:$0xff] }
  0x29   :  { %216 = vmatpush.msra.mxu1 %v199_v15  ;;  %252 = vmatpush.msra.mxu2 %v245_v34  ;;  %v238_v41 = vld [vmem:[#allocation8 + $0x38] sm:$0xff]  ;;  %v237_v42 = vld [vmem:[#allocation8 + $0x30] sm:$0xff]  ;;  %v236_v43 = vld [vmem:[#allocation8 + $0x28] sm:$0xff] }
  0x2a   :  { %176 = vmatpush.msra.mxu0 %v157_v12  ;;  %v235_v44 = vld [vmem:[#allocation8 + $0x20] sm:$0xff]  ;;  %v234_v45 = vld [vmem:[#allocation8 + $0x18] sm:$0xff]  ;;  %v233_v50 = vld [vmem:[#allocation8 + $0x10] sm:$0xff] }
  0x2b   :  { %217 = vmatpush.msra.mxu1 %v198_v17  ;;  %253 = vmatpush.msra.mxu2 %v244_v35  ;;  %v387_v46 = vld [vmem:[%s692_s2] ss:$0 sm:$0xff]  ;;  %v232_v51 = vld [vmem:[#allocation8 + $0x8] sm:$0xff]  ;;  %v231_v52 = vld [vmem:[#allocation8] sm:$0xff] }
  0x2c   :  { %177 = vmatpush.msra.mxu0 %v156_v14  ;;  %v147_v53 = vld [vmem:[#allocation10 + $0x78] sm:$0xff]  ;;  %v146_v54 = vld [vmem:[#allocation10 + $0x70] sm:$0xff]  ;;  %v145_v55 = vld [vmem:[#allocation10 + $0x68] sm:$0xff] }
  0x2d   :  { %218 = vmatpush.msra.mxu1 %v197_v19  ;;  %254 = vmatpush.msra.mxu2 %v243_v36  ;;  %v144_v56 = vld [vmem:[#allocation10 + $0x60] sm:$0xff]  ;;  %v143_v57 = vld [vmem:[#allocation10 + $0x58] sm:$0xff]  ;;  %v142_v58 = vld [vmem:[#allocation10 + $0x50] sm:$0xff] }
  0x2e   :  { %178 = vmatpush.msra.mxu0 %v155_v16  ;;  %275 = vmatpush.msra.mxu3 %v147_v53  ;;  %v141_v59 = vld [vmem:[#allocation10 + $0x48] sm:$0xff]  ;;  %v140_v60 = vld [vmem:[#allocation10 + $0x40] sm:$0xff]  ;;  %v139_v61 = vld [vmem:[#allocation10 + $0x38] sm:$0xff] }
  0x2f   :  { %219 = vmatpush.msra.mxu1 %v196_v21  ;;  %255 = vmatpush.msra.mxu2 %v242_v37  ;;  %v138_v62 = vld [vmem:[#allocation10 + $0x30] sm:$0xff]  ;;  %v137_v63 = vld [vmem:[#allocation10 + $0x28] sm:$0xff]  ;;  %v136_v0 = vld [vmem:[#allocation10 + $0x20] sm:$0xff] }
  0x30   :  { %179 = vmatpush.msra.mxu0 %v154_v18  ;;  %276 = vmatpush.msra.mxu3 %v146_v54  ;;  %v135_v1 = vld [vmem:[#allocation10 + $0x18] sm:$0xff]  ;;  %v134_v6 = vld [vmem:[#allocation10 + $0x10] sm:$0xff]  ;;  %v133_v7 = vld [vmem:[#allocation10 + $0x8] sm:$0xff] }
  0x31   :  { %220 = vmatpush.msra.mxu1 %v195_v23  ;;  %256 = vmatpush.msra.mxu2 %v241_v38  ;;  %v388_v2 = vld [vmem:[%s694_s4] ss:$0 sm:$0xff]  ;;  %v132_v8 = vld [vmem:[#allocation10] sm:$0xff]  ;;  %v331_v14 = vld [vmem:[#allocation11 + $0x70] sm:$0xff] }
  0x32   :  { %180 = vmatpush.msra.mxu0 %v153_v20  ;;  %277 = vmatpush.msra.mxu3 %v145_v55  ;;  %v389_v9 = vld [vmem:[%s696_s6] ss:$0 sm:$0xff]  ;;  %v330_v15 = vld [vmem:[#allocation11 + $0x68] sm:$0xff]  ;;  %v329_v16 = vld [vmem:[#allocation11 + $0x60] sm:$0xff] }
  0x33   :  { %221 = vmatpush.msra.mxu1 %v194_v25  ;;  %257 = vmatpush.msra.mxu2 %v240_v39  ;;  %v332_v13 = vld [vmem:[#allocation11 + $0x78] sm:$0xff]  ;;  %v327_v18 = vld [vmem:[#allocation11 + $0x50] sm:$0xff]  ;;  %v326_v19 = vld [vmem:[#allocation11 + $0x48] sm:$0xff] }
  0x34   :  { %181 = vmatpush.msra.mxu0 %v152_v22  ;;  %278 = vmatpush.msra.mxu3 %v144_v56  ;;  %v328_v17 = vld [vmem:[#allocation11 + $0x58] sm:$0xff]  ;;  %v325_v20 = vld [vmem:[#allocation11 + $0x40] sm:$0xff]  ;;  %v323_v22 = vld [vmem:[#allocation11 + $0x30] sm:$0xff] }
  0x35   :  { %222 = vmatpush.msra.mxu1 %v193_v27  ;;  %258 = vmatpush.msra.mxu2 %v239_v40  ;;  %v324_v21 = vld [vmem:[#allocation11 + $0x38] sm:$0xff]  ;;  %v322_v23 = vld [vmem:[#allocation11 + $0x28] sm:$0xff] }
  0x36   :  { %182 = vmatpush.msra.mxu0 %v151_v24  ;;  %279 = vmatpush.msra.mxu3 %v143_v57  ;;  %v321_v24 = vld [vmem:[#allocation11 + $0x20] sm:$0xff]  ;;  %v320_v25 = vld [vmem:[#allocation11 + $0x18] sm:$0xff] }
  0x37   :  { %223 = vmatpush.msra.mxu1 %v192_v30  ;;  %259 = vmatpush.msra.mxu2 %v238_v41  ;;  %v319_v30 = vld [vmem:[#allocation11 + $0x10] sm:$0xff]  ;;  %v391_v36 = vld [vmem:[%s700_s10] ss:$0 sm:$0xff] }
  0x38   :  { %183 = vmatpush.msra.mxu0 %v150_v26  ;;  %280 = vmatpush.msra.mxu3 %v142_v58  ;;  %v390_v26 = vld [vmem:[%s698_s8] ss:$0 sm:$0xff]  ;;  %s578_s8 = smov [#allocation13]  }
  0x39   :  { %224 = vmatpush.msra.mxu1 %v191_v31  ;;  %260 = vmatpush.msra.mxu2 %v237_v42  ;;  %v318_v31 = vld [vmem:[#allocation11 + $0x8] sm:$0xff]  ;;  %s363_s30 = sshll.u32 %s578_s8, 4  ;;  %s364_s30 = int_to_ptr.vmem [resolvable:$true] %s363_s30 }
  0x3a   :  { %184 = vmatpush.msra.mxu0 %v149_v28  ;;  %281 = vmatpush.msra.mxu3 %v141_v59 }
  0x3b   :  { %185 = vmatmul.f32.vlgmr.msra.gmra.mxu0 %v131_v29  ;;  %225 = vmatpush.msra.mxu1 %v190_v32  ;;  %v317_v32 = vld [vmem:[#allocation11] sm:$0xff] }
  0x3c   :  { %261 = vmatpush.msra.mxu2 %v236_v43  ;;  %296 = vmatpush.msrb.mxu0 %v147_v53 }
  0x3d   :  { %282 = vmatpush.msra.mxu3 %v140_v60  ;;  %337 = vmatpush.msrb.mxu1 %v332_v13 }
  0x3e   :  { %262 = vmatpush.msra.mxu2 %v235_v44  ;;  %297 = vmatpush.msrb.mxu0 %v146_v54 }
  0x3f   :  { %283 = vmatpush.msra.mxu3 %v139_v61  ;;  %338 = vmatpush.msrb.mxu1 %v331_v14 }
  0x40   :  { %263 = vmatpush.msra.mxu2 %v234_v45  ;;  %298 = vmatpush.msrb.mxu0 %v145_v55 }
  0x41   :  { %284 = vmatpush.msra.mxu3 %v138_v62  ;;  %339 = vmatpush.msrb.mxu1 %v330_v15 }
  0x42   :  { %264 = vmatpush.msra.mxu2 %v233_v50  ;;  %299 = vmatpush.msrb.mxu0 %v144_v56 }
  0x43   :  { %285 = vmatpush.msra.mxu3 %v137_v63  ;;  %340 = vmatpush.msrb.mxu1 %v329_v16 }
  0x44   :  { %265 = vmatpush.msra.mxu2 %v232_v51  ;;  %300 = vmatpush.msrb.mxu0 %v143_v57 }
  0x45   :  { %286 = vmatpush.msra.mxu3 %v136_v0  ;;  %341 = vmatpush.msrb.mxu1 %v328_v17 }
  0x46   :  { %266 = vmatpush.msra.mxu2 %v231_v52  ;;  %301 = vmatpush.msrb.mxu0 %v142_v58 }
  0x47   :  { %287 = vmatpush.msra.mxu3 %v135_v1  ;;  %342 = vmatpush.msrb.mxu1 %v327_v18 }
  0x48   :  { %302 = vmatpush.msrb.mxu0 %v141_v59 }
  0x49   :  { %288 = vmatpush.msra.mxu3 %v134_v6  ;;  %343 = vmatpush.msrb.mxu1 %v326_v19 }
  0x4a   :  { %303 = vmatpush.msrb.mxu0 %v140_v60 }
  0x4b   :  { %289 = vmatpush.msra.mxu3 %v133_v7  ;;  %344 = vmatpush.msrb.mxu1 %v325_v20 }
  0x4c   :  { %304 = vmatpush.msrb.mxu0 %v139_v61 }
  0x4d   :  { %290 = vmatpush.msra.mxu3 %v132_v8  ;;  %345 = vmatpush.msrb.mxu1 %v324_v21 }
  0x4e   :  { %305 = vmatpush.msrb.mxu0 %v138_v62 }
  0x4f   :  { %346 = vmatpush.msrb.mxu1 %v323_v22 }
  0x50   :  { %306 = vmatpush.msrb.mxu0 %v137_v63 }
  0x51   :  { %347 = vmatpush.msrb.mxu1 %v322_v23 }
  0x52   :  { %307 = vmatpush.msrb.mxu0 %v136_v0 }
  0x53   :  { %348 = vmatpush.msrb.mxu1 %v321_v24 }
  0x54   :  { %308 = vmatpush.msrb.mxu0 %v135_v1 }
  0x55   :  { %349 = vmatpush.msrb.mxu1 %v320_v25 }
  0x56   :  { %309 = vmatpush.msrb.mxu0 %v134_v6 }
  0x57   :  { %350 = vmatpush.msrb.mxu1 %v319_v30 }
  0x58   :  { %310 = vmatpush.msrb.mxu0 %v133_v7 }
  0x59   :  { %351 = vmatpush.msrb.mxu1 %v318_v31 }
  0x5a   :  { %311 = vmatpush.msrb.mxu0 %v132_v8 }
  0x5b   :  { %352 = vmatpush.msrb.mxu1 %v317_v32 }
  0xb8   :  { %v186_v47 = vpop.f32.mrf.mxu0 }
  0xb9   :  { %v187_v48 = vadd.f32 %v387_v46, %v186_v47 }
  0xbb   :  { %v189_v49 = vmax.f32 %v187_v48, 0.0 }
  0xbd   :  { %226 = vmatmul.f32.vlgmr.msra.gmra.mxu1 %v189_v49 }
 0x13a   :  { %v227_v3 = vpop.f32.mrf.mxu1 }
 0x13b   :  { %v228_v4 = vadd.f32 %v388_v2, %v227_v3 }
 0x13d   :  { %v230_v5 = vmax.f32 %v228_v4, 0.0 }
 0x13f   :  { %267 = vmatmul.f32.vlgmr.msra.gmra.mxu2 %v230_v5 }
 0x1c2   :  { %v268_v10 = vpop.f32.mrf.mxu2 }
 0x1c3   :  { %v269_v11 = vadd.f32 %v389_v9, %v268_v10 }
 0x1c5   :  { %v271_v12 = vmax.f32 %v269_v11, 0.0 }
 0x1c7   :  { %291 = vmatmul.f32.vlgmr.msra.gmra.mxu3 %v271_v12 }
 0x24a   :  { %v292_v27 = vpop.f32.mrf.mxu3 }
 0x24b   :  { %v293_v28 = vadd.f32 %v390_v26, %v292_v27 }
 0x24d   :  { %v295_v29 = vmax.f32 %v293_v28, 0.0 }
 0x24f   :  { %312 = vmatmul.f32.vlgmr.msrb.gmra.mxu0 %v295_v29 }
 0x2cc   :  { %v313_v33 = vpop.f32.mrf.mxu0 }
 0x2cd   :  { %v314_v34 = vadd.f32 %v390_v26, %v313_v33 }
 0x2cf   :  { %v316_v35 = vmax.f32 %v314_v34, 0.0 }
 0x2d1   :  { %353 = vmatmul.f32.vlgmr.msrb.gmra.mxu1 %v316_v35 }
 0x34e   :  { %v354_v37 = vpop.f32.mrf.mxu1 }
 0x34f   :  { %v355_v38 = vadd.f32 %v391_v36, %v354_v37 }
 0x351   :  { %357 = vst [vmem:[#allocation13] sm:$0xff] %v355_v38 }
 0x352   :  { %368 = dma.vmem_to_hbm [thread:$0]  %s364_s30, 128, %s366_s13, [#allocation4]  }
 0x353   :  { %568 = dma.done.wait [#allocation4], 128  }
 0x354   :  { %569 = vsyncadd [#allocation4], 4294967168 }
 0x355   :  { %373 = vsyncpa [#allocation3], 1 }
 0x356   :  { %374 = vsyncpa [#allocation6], 1 }
 0x357   :  { %375 = vsyncpa [#allocation9], 1 }
 0x358   :  { %376 = vsyncpa [#allocation12], 1 }
 0x359   :  { %377 = vsyncpa [#allocation4], 1 }

</bundles_post_ra>
